<compile_context>
chip_gen: v7x
topology: tpu7x:2x2x1
jax: 0.10.0
libtpu: 0.0.40
codegen_flags: <defaults>
</compile_context>

<pallas_src>
import functools

import jax
import jax.numpy as jnp
import numpy as np
from jax.experimental import pallas as pl
from jax.experimental.pallas import tpu as pltpu

# Halo rows added above/below the image.  3 (not 2) keeps every 3x3-tap slice
# of the slab statically in-bounds, so taps are plain static slices.
_PAD = 3


def _residual_block_kernel(x_ref, w1_ref, w2_ref, mask_ref, o_ref, h_ref,
                           *, W, TH, Cp, mm_dtype):
    """Fused ReLU(Conv2(ReLU(Conv1(x)))) + x for one (batch, row-tile) step.

    x_ref   : (Cp, (TH+6)*W)   input row slab; 3 halo rows above/below
                               (halo rows beyond the image are physical zeros)
    w1_ref  : (Cp, 9*Cp)       conv1 weights, columns ordered (kh, kw, c_in)
    w2_ref  : (Cp, 9*Cp)       conv2 weights
    mask_ref: (2, 1, (TH+2)*W) horizontal edge masks {left-neighbor-valid,
                               right-neighbor-valid}, W-periodic {0,1}
    o_ref   : (Cp, TH*W)       output tile (lane-dense when TH*W % 128 == 0)
    h_ref   : (Cp, (TH+4)*W)   VMEM scratch for the conv1 activation slab
                               (one zero row above/below keeps conv2's tap
                               slices in-bounds and zero where masked)
    """
    Lh = (TH + 2) * W                 # conv1 activation slab (1-row halo)
    Lo = TH * W                       # output tile length
    base = (_PAD - 1) * W             # slab offset of the first conv1 row
    m_left = mask_ref[0]              # (1, Lh); 0 where col == 0
    m_right = mask_ref[1]             # (1, Lh); 0 where col == W-1

    def conv3x3(src_ref, src_base, length, w_ref, ml, mr):
        # Tap (kh, kw) is a statically-offset slice of the slab.  The 1-lane
        # column spill across row ends is zeroed by the edge mask; vertical
        # spill lands in physically-zero halo rows.
        def tap(kh, kw):
            dh, dw = kh - 1, kw - 1
            off = src_base + dh * W + dw
            t = src_ref[:, off:off + length]          # f32 load
            if dw < 0:
                t = t * ml
            elif dw > 0:
                t = t * mr
            return t

        if Cp >= 128:
            # Per-tap accumulated matmuls: K = Cp per dot, no (9*Cp, L) slab,
            # each shifted/masked tap is consumed immediately.
            acc = None
            for kh in range(3):
                for kw in range(3):
                    i = kh * 3 + kw
                    part = jnp.dot(w_ref[:, i * Cp:(i + 1) * Cp],
                                   tap(kh, kw).astype(mm_dtype),
                                   preferred_element_type=jnp.float32)
                    acc = part if acc is None else acc + part
            return acc
        # Tiny-Cp path (test shapes): one fused K = 9*Cp matmul.
        col = jnp.concatenate(
            [tap(kh, kw) for kh in range(3) for kw in range(3)], axis=0)
        return jnp.dot(w_ref[...], col.astype(mm_dtype),
                       preferred_element_type=jnp.float32)

    # ---- Conv1 + ReLU over the (TH+2)-row activation slab (stays in VMEM).
    h = jnp.maximum(conv3x3(x_ref, base, Lh, w1_ref, m_left, m_right), 0.0)
    h_ref[:, 0:W] = jnp.zeros((Cp, W), jnp.float32)              # top zero row
    h_ref[:, W:W + Lh] = h
    h_ref[:, W + Lh:W + Lh + W] = jnp.zeros((Cp, W), jnp.float32)  # bottom

    # Conv2's vertical zero padding: conv1 rows that fall OUTSIDE the image
    # (only possible in the first / last row tile) must be zero, not
    # conv1-of-padded-x.  Cheap conditional strip stores.
    t_idx = pl.program_id(1)

    @pl.when(t_idx == 0)
    def _():                                       # h row at image row -1
        h_ref[:, W:2 * W] = jnp.zeros((Cp, W), jnp.float32)

    @pl.when(t_idx == pl.num_programs(1) - 1)
    def _():                                       # h row at image row H
        h_ref[:, (TH + 2) * W:(TH + 3) * W] = jnp.zeros((Cp, W), jnp.float32)

    # ---- Conv2 + ReLU over the output tile rows.
    y = jnp.maximum(
        conv3x3(h_ref, 2 * W, Lo, w2_ref, m_left[:, :Lo], m_right[:, :Lo]),
        0.0)

    # ---- Residual add: re-read the shortcut rows straight from the ref.
    o_ref[...] = (y + x_ref[:, _PAD * W:_PAD * W + Lo]).astype(o_ref.dtype)


def _weights_to_matmul(w_oihw, c_pad, dtype):
    """PyTorch OIHW (C,C,3,3) -> (Cp, 9*Cp); columns ordered (kh, kw, c_in)."""
    C = w_oihw.shape[0]
    w = jnp.pad(w_oihw, ((0, c_pad - C), (0, c_pad - C), (0, 0), (0, 0)))
    return jnp.transpose(w, (0, 2, 3, 1)).reshape(c_pad, 9 * c_pad).astype(dtype)


def _edge_masks(W, length):
    """{0,1} masks zeroing the column spill of the dw=-1 / dw=+1 taps."""
    col = np.arange(length) % W
    left_ok = (col != 0).astype(np.float32)        # dw = -1 invalid at col 0
    right_ok = (col != W - 1).astype(np.float32)   # dw = +1 invalid at col W-1
    return jnp.asarray(np.stack([left_ok, right_ok])[:, None, :])  # (2,1,L)


def _pick_row_tile(H, W):
    """Row-tile height: divides H, keeps the output tile lane-dense
    (TH*W % 128 == 0), prefers >= 2 tiles (megacore + pipelining) and
    >= 1024 output lanes per tile (amortize per-grid-step overhead)."""
    cands = [d for d in range(1, H) if H % d == 0 and (d * W) % 128 == 0]
    if not cands:
        return H                     # fall back to a single whole-image tile
    big = [d for d in cands if d * W >= 1024]
    return big[0] if big else cands[-1]


def horse2zebra_residual_block(x_nchw, w1_oihw, w2_oihw,
                               *, matmul_dtype=jnp.bfloat16):
    """Pallas implementation of HORSE2ZEBRA_ResidualBlock.forward (NCHW)."""
    N, C, H, W = x_nchw.shape
    Cp = ((C + 7) // 8) * 8                 # sublane-align channels
    TH = _pick_row_tile(H, W)
    T = H // TH
    S = TH + 2 * _PAD                       # input slab rows per tile
    Lx, Lh, Lo = S * W, (TH + 2) * W, TH * W

    x = x_nchw
    if Cp != C:
        x = jnp.pad(x, ((0, 0), (0, Cp - C), (0, 0), (0, 0)))
    # Zero halo rows implement the conv's vertical zero padding physically.
    xp = jnp.pad(x, ((0, 0), (0, 0), (_PAD, _PAD), (0, 0)))    # (N,Cp,H+6,W)
    # Pre-gather overlapping row slabs so each grid step is a plain
    # rectangular, double-bufferable block: (N, T, Cp, S*W).
    rows = np.arange(T)[:, None] * TH + np.arange(S)[None, :]  # (T, S)
    x_tiles = jnp.transpose(xp[:, :, rows, :], (0, 2, 1, 3, 4)).reshape(
        N, T, Cp, Lx)

    w1 = _weights_to_matmul(w1_oihw, Cp, matmul_dtype)
    w2 = _weights_to_matmul(w2_oihw, Cp, matmul_dtype)
    masks = _edge_masks(W, Lh)

    kernel = functools.partial(_residual_block_kernel, W=W, TH=TH, Cp=Cp,
                               mm_dtype=matmul_dtype)

    # Explicit scoped-VMEM budget from the actual block sizes (+ headroom),
    # capped at v7x's 64 MiB physical VMEM.
    esize = x_nchw.dtype.itemsize
    wsize = jnp.dtype(matmul_dtype).itemsize
    need = (2 * Cp * Lx * esize              # input slab, double-buffered
            + 2 * Cp * Lo * esize            # output tile, double-buffered
            + 2 * Cp * 9 * Cp * wsize        # w1 + w2, single-buffered
            + 2 * Lh * 4                     # edge masks, single-buffered
            + Cp * (TH + 4) * W * 4)         # conv1 activation scratch
    vmem_limit = int(min(64 * 1024 * 1024, 2 * need + (16 << 20)))

    out_flat = pl.pallas_call(
        kernel,
        out_shape=jax.ShapeDtypeStruct((N, Cp, H * W), x_nchw.dtype),
        grid_spec=pltpu.PrefetchScalarGridSpec(
            num_scalar_prefetch=0,
            grid=(N, T),
            in_specs=[
                # per-(batch, row-tile) input slab
                pl.BlockSpec((None, None, Cp, Lx), lambda n, t: (n, t, 0, 0)),
                # grid-invariant operands: fetched once, single-buffered
                pl.BlockSpec((Cp, 9 * Cp), lambda n, t: (0, 0),
                             pipeline_mode=pl.Buffered(1)),
                pl.BlockSpec((Cp, 9 * Cp), lambda n, t: (0, 0),
                             pipeline_mode=pl.Buffered(1)),
                pl.BlockSpec((2, 1, Lh), lambda n, t: (0, 0, 0),
                             pipeline_mode=pl.Buffered(1)),
            ],
            out_specs=pl.BlockSpec((None, Cp, Lo), lambda n, t: (n, 0, t)),
            scratch_shapes=[pltpu.VMEM((Cp, (TH + 4) * W), jnp.float32)],
        ),
        compiler_params=pltpu.CompilerParams(
            dimension_semantics=("parallel", "parallel"),
            vmem_limit_bytes=vmem_limit),
    )(x_tiles, w1, w2, masks)

    out = out_flat.reshape(N, Cp, H, W)
    return out[:, :C] if Cp != C else out


def _reference(x_nchw, w1_oihw, w2_oihw):
    """Pure-JAX reference matching the PyTorch module semantics (f32)."""
    def conv(x, w):
        return jax.lax.conv_general_dilated(
            x, w, window_strides=(1, 1), padding="SAME",
            dimension_numbers=("NCHW", "OIHW", "NCHW"))
    h = jax.nn.relu(conv(x_nchw, w1_oihw))
    return jax.nn.relu(conv(h, w2_oihw)) + x_nchw


if __name__ == "__main__":
    N, C, H, W = 2, 4, 16, 16   # small shapes consistent with the module

    key = jax.random.PRNGKey(0)
    kx, k1, k2 = jax.random.split(key, 3)

    x = jax.random.normal(kx, (N, C, H, W), dtype=jnp.float32)
    # Synthetic Conv2d weights in PyTorch OIHW layout (C, C, 3, 3).
    w1 = 0.1 * jax.random.normal(k1, (C, C, 3, 3), dtype=jnp.float32)
    w2 = 0.1 * jax.random.normal(k2, (C, C, 3, 3), dtype=jnp.float32)

    fn = jax.jit(horse2zebra_residual_block)
    out = jax.block_until_ready(fn(x, w1, w2))
    ref = jax.block_until_ready(_reference(x, w1, w2))

    # bf16 MXU operands (f32 accumulate) -> looser tolerance than pure f32.
    np.testing.assert_allclose(np.asarray(out), np.asarray(ref),
                               rtol=2e-2, atol=3e-2)
    print("KERNEL_OK")
</pallas_src>

<mosaic_0001>
module attributes {stable_mosaic.version = 11 : i64} {
  func.func @_residual_block_kernel(%arg0: i32, %arg1: i32, %arg2: memref<1x1x8x224xf32, #tpu.memory_space<vmem>>, %arg3: memref<8x72xbf16, #tpu.memory_space<vmem>>, %arg4: memref<8x72xbf16, #tpu.memory_space<vmem>>, %arg5: memref<2x1x160xf32, #tpu.memory_space<vmem>>, %arg6: memref<1x8x128xf32, #tpu.memory_space<vmem>>, %arg7: memref<8x192xf32, #tpu.memory_space<vmem>>) attributes {dimension_semantics = [#tpu.dimension_semantics<parallel>, #tpu.dimension_semantics<parallel>], iteration_bounds = array<i64: 2, 2>, scalar_prefetch = 0 : i64, scratch_operands = 1 : i64, tpu.core_type = #tpu.core_type<tc>, window_params = [{transform_indices = @transform_0, window_bounds = array<i64: 1, 1, 8, 224>}, {pipeline_mode = #tpu.pipeline_mode<synchronous>, transform_indices = @transform_1, window_bounds = array<i64: 8, 72>}, {pipeline_mode = #tpu.pipeline_mode<synchronous>, transform_indices = @transform_2, window_bounds = array<i64: 8, 72>}, {pipeline_mode = #tpu.pipeline_mode<synchronous>, transform_indices = @transform_3, window_bounds = array<i64: 2, 1, 160>}, {transform_indices = @transform_4, window_bounds = array<i64: 1, 8, 128>}]} {
    %c0 = arith.constant 0 : index
    %c0_0 = arith.constant 0 : index
    %c0_1 = arith.constant 0 : index
    %0 = vector.load %arg5[%c0, %c0_0, %c0_1] : memref<2x1x160xf32, #tpu.memory_space<vmem>>, vector<1x1x160xf32>
    %1 = vector.shape_cast %0 : vector<1x1x160xf32> to vector<1x160xf32>
    %c1 = arith.constant 1 : index
    %c0_2 = arith.constant 0 : index
    %c0_3 = arith.constant 0 : index
    %2 = vector.load %arg5[%c1, %c0_2, %c0_3] : memref<2x1x160xf32, #tpu.memory_space<vmem>>, vector<1x1x160xf32>
    %3 = vector.shape_cast %2 : vector<1x1x160xf32> to vector<1x160xf32>
    %c0_4 = arith.constant 0 : index
    %c0_5 = arith.constant 0 : index
    %c0_6 = arith.constant 0 : index
    %c15 = arith.constant 15 : index
    %4 = vector.load %arg2[%c0_4, %c0_5, %c0_6, %c15] : memref<1x1x8x224xf32, #tpu.memory_space<vmem>>, vector<1x1x8x160xf32>
    %5 = vector.shape_cast %4 : vector<1x1x8x160xf32> to vector<8x160xf32>
    %6 = vector.broadcast %1 : vector<1x160xf32> to vector<8x160xf32>
    %7 = arith.mulf %5, %6 : vector<8x160xf32>
    %c0_7 = arith.constant 0 : index
    %c0_8 = arith.constant 0 : index
    %c0_9 = arith.constant 0 : index
    %c16 = arith.constant 16 : index
    %8 = vector.load %arg2[%c0_7, %c0_8, %c0_9, %c16] : memref<1x1x8x224xf32, #tpu.memory_space<vmem>>, vector<1x1x8x160xf32>
    %9 = vector.shape_cast %8 : vector<1x1x8x160xf32> to vector<8x160xf32>
    %c0_10 = arith.constant 0 : index
    %c0_11 = arith.constant 0 : index
    %c0_12 = arith.constant 0 : index
    %c17 = arith.constant 17 : index
    %10 = vector.load %arg2[%c0_10, %c0_11, %c0_12, %c17] : memref<1x1x8x224xf32, #tpu.memory_space<vmem>>, vector<1x1x8x160xf32>
    %11 = vector.shape_cast %10 : vector<1x1x8x160xf32> to vector<8x160xf32>
    %12 = vector.broadcast %3 : vector<1x160xf32> to vector<8x160xf32>
    %13 = arith.mulf %11, %12 : vector<8x160xf32>
    %c0_13 = arith.constant 0 : index
    %c0_14 = arith.constant 0 : index
    %c0_15 = arith.constant 0 : index
    %c31 = arith.constant 31 : index
    %14 = vector.load %arg2[%c0_13, %c0_14, %c0_15, %c31] : memref<1x1x8x224xf32, #tpu.memory_space<vmem>>, vector<1x1x8x160xf32>
    %15 = vector.shape_cast %14 : vector<1x1x8x160xf32> to vector<8x160xf32>
    %16 = vector.broadcast %1 : vector<1x160xf32> to vector<8x160xf32>
    %17 = arith.mulf %15, %16 : vector<8x160xf32>
    %c0_16 = arith.constant 0 : index
    %c0_17 = arith.constant 0 : index
    %c0_18 = arith.constant 0 : index
    %c32 = arith.constant 32 : index
    %18 = vector.load %arg2[%c0_16, %c0_17, %c0_18, %c32] : memref<1x1x8x224xf32, #tpu.memory_space<vmem>>, vector<1x1x8x160xf32>
    %19 = vector.shape_cast %18 : vector<1x1x8x160xf32> to vector<8x160xf32>
    %c0_19 = arith.constant 0 : index
    %c0_20 = arith.constant 0 : index
    %c0_21 = arith.constant 0 : index
    %c33 = arith.constant 33 : index
    %20 = vector.load %arg2[%c0_19, %c0_20, %c0_21, %c33] : memref<1x1x8x224xf32, #tpu.memory_space<vmem>>, vector<1x1x8x160xf32>
    %21 = vector.shape_cast %20 : vector<1x1x8x160xf32> to vector<8x160xf32>
    %22 = vector.broadcast %3 : vector<1x160xf32> to vector<8x160xf32>
    %23 = arith.mulf %21, %22 : vector<8x160xf32>
    %c0_22 = arith.constant 0 : index
    %c0_23 = arith.constant 0 : index
    %c0_24 = arith.constant 0 : index
    %c47 = arith.constant 47 : index
    %24 = vector.load %arg2[%c0_22, %c0_23, %c0_24, %c47] : memref<1x1x8x224xf32, #tpu.memory_space<vmem>>, vector<1x1x8x160xf32>
    %25 = vector.shape_cast %24 : vector<1x1x8x160xf32> to vector<8x160xf32>
    %26 = vector.broadcast %1 : vector<1x160xf32> to vector<8x160xf32>
    %27 = arith.mulf %25, %26 : vector<8x160xf32>
    %c0_25 = arith.constant 0 : index
    %c0_26 = arith.constant 0 : index
    %c0_27 = arith.constant 0 : index
    %c48 = arith.constant 48 : index
    %28 = vector.load %arg2[%c0_25, %c0_26, %c0_27, %c48] : memref<1x1x8x224xf32, #tpu.memory_space<vmem>>, vector<1x1x8x160xf32>
    %29 = vector.shape_cast %28 : vector<1x1x8x160xf32> to vector<8x160xf32>
    %c0_28 = arith.constant 0 : index
    %c0_29 = arith.constant 0 : index
    %c0_30 = arith.constant 0 : index
    %c49 = arith.constant 49 : index
    %30 = vector.load %arg2[%c0_28, %c0_29, %c0_30, %c49] : memref<1x1x8x224xf32, #tpu.memory_space<vmem>>, vector<1x1x8x160xf32>
    %31 = vector.shape_cast %30 : vector<1x1x8x160xf32> to vector<8x160xf32>
    %32 = vector.broadcast %3 : vector<1x160xf32> to vector<8x160xf32>
    %33 = arith.mulf %31, %32 : vector<8x160xf32>
    %34 = tpu.concatenate %7, %9, %13, %17, %19, %23, %27, %29, %33 in 0 : vector<8x160xf32>, vector<8x160xf32>, vector<8x160xf32>, vector<8x160xf32>, vector<8x160xf32>, vector<8x160xf32>, vector<8x160xf32>, vector<8x160xf32>, vector<8x160xf32> -> vector<72x160xf32>
    %c0_31 = arith.constant 0 : index
    %c0_32 = arith.constant 0 : index
    %35 = vector.load %arg3[%c0_31, %c0_32] : memref<8x72xbf16, #tpu.memory_space<vmem>>, vector<8x72xbf16>
    %36 = arith.truncf %34 : vector<72x160xf32> to vector<72x160xbf16>
    %cst = arith.constant dense<0.000000e+00> : vector<8x160xf32>
    %37 = tpu.matmul %35, %36, %cst {dimension_numbers = #tpu.dot_dimension_numbers<[1], [0], [0], [1], [0, 0, 1, 1], [], []>} : vector<8x72xbf16>, vector<72x160xbf16>, vector<8x160xf32> -> vector<8x160xf32>
    %cst_33 = arith.constant 0.000000e+00 : f32
    %38 = vector.broadcast %cst_33 : f32 to vector<8x160xf32>
    %39 = arith.maximumf %37, %38 : vector<8x160xf32>
    %cst_34 = arith.constant 0.000000e+00 : f32
    %40 = vector.broadcast %cst_34 : f32 to vector<8x16xf32>
    %c0_35 = arith.constant 0 : index
    %c0_36 = arith.constant 0 : index
    %41 = vector.load %arg7[%c0_35, %c0_36] : memref<8x192xf32, #tpu.memory_space<vmem>>, vector<8x16xf32>
    tpu.vector_store %arg7[%c0_35, %c0_36], %40 {strides = array<i32>} : memref<8x192xf32, #tpu.memory_space<vmem>>, vector<8x16xf32>,
    %c0_37 = arith.constant 0 : index
    %c16_38 = arith.constant 16 : index
    %42 = vector.load %arg7[%c0_37, %c16_38] : memref<8x192xf32, #tpu.memory_space<vmem>>, vector<8x160xf32>
    tpu.vector_store %arg7[%c0_37, %c16_38], %39 {strides = array<i32>} : memref<8x192xf32, #tpu.memory_space<vmem>>, vector<8x160xf32>,
    %cst_39 = arith.constant 0.000000e+00 : f32
    %43 = vector.broadcast %cst_39 : f32 to vector<8x16xf32>
    %c0_40 = arith.constant 0 : index
    %c176 = arith.constant 176 : index
    %44 = vector.load %arg7[%c0_40, %c176] : memref<8x192xf32, #tpu.memory_space<vmem>>, vector<8x16xf32>
    tpu.vector_store %arg7[%c0_40, %c176], %43 {strides = array<i32>} : memref<8x192xf32, #tpu.memory_space<vmem>>, vector<8x16xf32>,
    %c0_i32 = arith.constant 0 : i32
    %45 = arith.cmpi eq, %arg1, %c0_i32 : i32
    %46 = arith.extui %45 : i1 to i32
    %c0_i32_41 = arith.constant 0 : i32
    %47 = arith.cmpi ne, %46, %c0_i32_41 : i32
    scf.if %47 {
      %cst_72 = arith.constant 0.000000e+00 : f32
      %86 = vector.broadcast %cst_72 : f32 to vector<8x16xf32>
      %c0_73 = arith.constant 0 : index
      %c16_74 = arith.constant 16 : index
      %87 = vector.load %arg7[%c0_73, %c16_74] : memref<8x192xf32, #tpu.memory_space<vmem>>, vector<8x16xf32>
      tpu.vector_store %arg7[%c0_73, %c16_74], %86 {strides = array<i32>} : memref<8x192xf32, #tpu.memory_space<vmem>>, vector<8x16xf32>,
    } else {
    }
    %c1_i32 = arith.constant 1 : i32
    %48 = arith.cmpi eq, %arg1, %c1_i32 : i32
    %49 = arith.extui %48 : i1 to i32
    %c0_i32_42 = arith.constant 0 : i32
    %50 = arith.cmpi ne, %49, %c0_i32_42 : i32
    scf.if %50 {
      %cst_72 = arith.constant 0.000000e+00 : f32
      %86 = vector.broadcast %cst_72 : f32 to vector<8x16xf32>
      %c0_73 = arith.constant 0 : index
      %c160 = arith.constant 160 : index
      %87 = vector.load %arg7[%c0_73, %c160] : memref<8x192xf32, #tpu.memory_space<vmem>>, vector<8x16xf32>
      tpu.vector_store %arg7[%c0_73, %c160], %86 {strides = array<i32>} : memref<8x192xf32, #tpu.memory_space<vmem>>, vector<8x16xf32>,
    } else {
    }
    %51 = vector.extract_strided_slice %1 {offsets = [0, 0], sizes = [1, 128], strides = [1, 1]} : vector<1x160xf32> to vector<1x128xf32>
    %52 = vector.extract_strided_slice %3 {offsets = [0, 0], sizes = [1, 128], strides = [1, 1]} : vector<1x160xf32> to vector<1x128xf32>
    %c0_43 = arith.constant 0 : index
    %c15_44 = arith.constant 15 : index
    %53 = vector.load %arg7[%c0_43, %c15_44] : memref<8x192xf32, #tpu.memory_space<vmem>>, vector<8x128xf32>
    %54 = vector.broadcast %51 : vector<1x128xf32> to vector<8x128xf32>
    %55 = arith.mulf %53, %54 : vector<8x128xf32>
    %c0_45 = arith.constant 0 : index
    %c16_46 = arith.constant 16 : index
    %56 = vector.load %arg7[%c0_45, %c16_46] : memref<8x192xf32, #tpu.memory_space<vmem>>, vector<8x128xf32>
    %c0_47 = arith.constant 0 : index
    %c17_48 = arith.constant 17 : index
    %57 = vector.load %arg7[%c0_47, %c17_48] : memref<8x192xf32, #tpu.memory_space<vmem>>, vector<8x128xf32>
    %58 = vector.broadcast %52 : vector<1x128xf32> to vector<8x128xf32>
    %59 = arith.mulf %57, %58 : vector<8x128xf32>
    %c0_49 = arith.constant 0 : index
    %c31_50 = arith.constant 31 : index
    %60 = vector.load %arg7[%c0_49, %c31_50] : memref<8x192xf32, #tpu.memory_space<vmem>>, vector<8x128xf32>
    %61 = vector.broadcast %51 : vector<1x128xf32> to vector<8x128xf32>
    %62 = arith.mulf %60, %61 : vector<8x128xf32>
    %c0_51 = arith.constant 0 : index
    %c32_52 = arith.constant 32 : index
    %63 = vector.load %arg7[%c0_51, %c32_52] : memref<8x192xf32, #tpu.memory_space<vmem>>, vector<8x128xf32>
    %c0_53 = arith.constant 0 : index
    %c33_54 = arith.constant 33 : index
    %64 = vector.load %arg7[%c0_53, %c33_54] : memref<8x192xf32, #tpu.memory_space<vmem>>, vector<8x128xf32>
    %65 = vector.broadcast %52 : vector<1x128xf32> to vector<8x128xf32>
    %66 = arith.mulf %64, %65 : vector<8x128xf32>
    %c0_55 = arith.constant 0 : index
    %c47_56 = arith.constant 47 : index
    %67 = vector.load %arg7[%c0_55, %c47_56] : memref<8x192xf32, #tpu.memory_space<vmem>>, vector<8x128xf32>
    %68 = vector.broadcast %51 : vector<1x128xf32> to vector<8x128xf32>
    %69 = arith.mulf %67, %68 : vector<8x128xf32>
    %c0_57 = arith.constant 0 : index
    %c48_58 = arith.constant 48 : index
    %70 = vector.load %arg7[%c0_57, %c48_58] : memref<8x192xf32, #tpu.memory_space<vmem>>, vector<8x128xf32>
    %c0_59 = arith.constant 0 : index
    %c49_60 = arith.constant 49 : index
    %71 = vector.load %arg7[%c0_59, %c49_60] : memref<8x192xf32, #tpu.memory_space<vmem>>, vector<8x128xf32>
    %72 = vector.broadcast %52 : vector<1x128xf32> to vector<8x128xf32>
    %73 = arith.mulf %71, %72 : vector<8x128xf32>
    %74 = tpu.concatenate %55, %56, %59, %62, %63, %66, %69, %70, %73 in 0 : vector<8x128xf32>, vector<8x128xf32>, vector<8x128xf32>, vector<8x128xf32>, vector<8x128xf32>, vector<8x128xf32>, vector<8x128xf32>, vector<8x128xf32>, vector<8x128xf32> -> vector<72x128xf32>
    %c0_61 = arith.constant 0 : index
    %c0_62 = arith.constant 0 : index
    %75 = vector.load %arg4[%c0_61, %c0_62] : memref<8x72xbf16, #tpu.memory_space<vmem>>, vector<8x72xbf16>
    %76 = arith.truncf %74 : vector<72x128xf32> to vector<72x128xbf16>
    %cst_63 = arith.constant dense<0.000000e+00> : vector<8x128xf32>
    %77 = tpu.matmul %75, %76, %cst_63 {dimension_numbers = #tpu.dot_dimension_numbers<[1], [0], [0], [1], [0, 0, 1, 1], [], []>} : vector<8x72xbf16>, vector<72x128xbf16>, vector<8x128xf32> -> vector<8x128xf32>
    %cst_64 = arith.constant 0.000000e+00 : f32
    %78 = vector.broadcast %cst_64 : f32 to vector<8x128xf32>
    %79 = arith.maximumf %77, %78 : vector<8x128xf32>
    %c0_65 = arith.constant 0 : index
    %c0_66 = arith.constant 0 : index
    %c0_67 = arith.constant 0 : index
    %c48_68 = arith.constant 48 : index
    %80 = vector.load %arg2[%c0_65, %c0_66, %c0_67, %c48_68] : memref<1x1x8x224xf32, #tpu.memory_space<vmem>>, vector<1x1x8x128xf32>
    %81 = vector.shape_cast %80 : vector<1x1x8x128xf32> to vector<8x128xf32>
    %82 = arith.addf %79, %81 : vector<8x128xf32>
    %c0_69 = arith.constant 0 : index
    %c0_70 = arith.constant 0 : index
    %c0_71 = arith.constant 0 : index
    %83 = vector.load %arg6[%c0_69, %c0_70, %c0_71] : memref<1x8x128xf32, #tpu.memory_space<vmem>>, vector<1x8x128xf32>
    %84 = vector.shape_cast %83 : vector<1x8x128xf32> to vector<8x128xf32>
    %85 = vector.shape_cast %82 : vector<8x128xf32> to vector<1x8x128xf32>
    tpu.vector_store %arg6[%c0_69, %c0_70, %c0_71], %85 {strides = array<i32>} : memref<1x8x128xf32, #tpu.memory_space<vmem>>, vector<1x8x128xf32>,
    return
  }
  func.func @transform_0(%arg0: i32, %arg1: i32) -> (i32, i32, i32, i32) {
    %c0_i32 = arith.constant 0 : i32
    %c0_i32_0 = arith.constant 0 : i32
    %c0_i32_1 = arith.constant 0 : i32
    return %arg0, %arg1, %c0_i32, %c0_i32_0 : i32, i32, i32, i32
  }
  func.func @transform_1(%arg0: i32, %arg1: i32) -> (i32, i32) {
    %c0_i32 = arith.constant 0 : i32
    %c0_i32_0 = arith.constant 0 : i32
    %c0_i32_1 = arith.constant 0 : i32
    return %c0_i32, %c0_i32_0 : i32, i32
  }
  func.func @transform_2(%arg0: i32, %arg1: i32) -> (i32, i32) {
    %c0_i32 = arith.constant 0 : i32
    %c0_i32_0 = arith.constant 0 : i32
    %c0_i32_1 = arith.constant 0 : i32
    return %c0_i32, %c0_i32_0 : i32, i32
  }
  func.func @transform_3(%arg0: i32, %arg1: i32) -> (i32, i32, i32) {
    %c0_i32 = arith.constant 0 : i32
    %c0_i32_0 = arith.constant 0 : i32
    %c0_i32_1 = arith.constant 0 : i32
    %c0_i32_2 = arith.constant 0 : i32
    return %c0_i32, %c0_i32_0, %c0_i32_1 : i32, i32, i32
  }
  func.func @transform_4(%arg0: i32, %arg1: i32) -> (i32, i32, i32) {
    %c0_i32 = arith.constant 0 : i32
    %c0_i32_0 = arith.constant 0 : i32
    return %arg0, %c0_i32, %arg1 : i32, i32, i32
  }
}

</mosaic_0001>

<bundles_post_ra>
// kernel: horse2zebra_residual_block.1
= control target key start
LH: loop header
LB: loop body
LE: loop exit
PB: predicated region body
PF: predicated region fallthrough
CT: control target
= control target key end

     0   :  { %s1078_s15 = smov 0   ;;  %s1080_s16 = smov 0   ;;  %s1269_s0 = inlined_call_operand.vmem [shape: f32[2,2,8,224], index: 0, kind: input, shape index: {}]   ;;  %s1270_s1 = inlined_call_operand.vmem [shape: bf16[8,72], index: 1, kind: input, shape index: {}]   ;;  %s1271_s2 = inlined_call_operand.vmem [shape: bf16[8,72], index: 2, kind: input, shape index: {}]   ;;  %s1272_s3 = inlined_call_operand.vmem [shape: f32[2,1,160], index: 3, kind: input, shape index: {}]   ;;  %s1273_s4 = inlined_call_operand.vmem [shape: f32[2,8,256], index: 4, kind: output, shape index: {}]  }
   0x1   :  { %s1082_s17 = smov 0   ;;  %s1084_s18 = smov 0  }
   0x2   :  { %s1086_s19 = smov 0  }
   0x3 LB: > { %s23_s20 = sadd.s32 1, %s1021_s17  ;;  %s26_s21 = sadd.s32 1, %s1025_s18  ;;  %s1029_s19 = sphi %s1086_s19, %s14_s19   ;;  %s1025_s18 = sphi %s1084_s18, %s1279_s18   ;;  %s1021_s17 = sphi %s1082_s17, %s1278_s17   ;;  %s1017_s16 = sphi %s1080_s16, %s1277_s16   ;;  %s1013_s15 = sphi %s1078_s15, %s1276_s15  }
   0x4   : > { %p24_p0 = scmp.ge.s32.totalorder %s23_s20, 2  ;;  %p815_p1 = scmp.ge.s32.totalorder %s1029_s19, 1 }
   0x5   : > { %p182_p2 = scmp.lt.s32.totalorder %s1029_s19, 5 }
   0x6   : > { %s1281_s20 = smov (%p24_p0, %s23_s20), 0  ;;  %s1283_s21 = smov (!%p24_p0, %s26_s21), %s1025_s18 }
   0x7   : > { %p183_p3 = pnand %p815_p1, %p182_p2  ;;  %p28_p4 = scmp.ge.s32.totalorder %s1283_s21, 2 }
   0x8   : > { %v239_v0 = vlaneseq (!%p183_p3)  ;;  %v821_v2 = vld [vmem:[%s1272_s3 + $0x2] sm:$0x3] (!%p183_p3)  ;;  %v233_v3 = vld [vmem:[%s1272_s3] sm:$0x3] (!%p183_p3)  ;;  %p215_p5 = scmp.lt.s32.totalorder (!%p183_p3), %s1017_s16, 1  ;;  %p217_p6 = scmp.lt.s32.totalorder (!%p183_p3), %s1013_s15, 1 }
   0x9   : > { %s1285_s21 = smov (%p28_p4, %s1283_s21), 0  ;;  %186 = sbr.rel (%p183_p3) target bundleno = 1210 (0x4ba), region = 36 }
   0xa   : > { %v240_v1 = vshrl.u32 (!%p183_p3), %v239_v0, 7  ;;  %s1031_s28 = smov (!%p183_p3), 17   ;;  %s1032_s29 = smov (!%p183_p3), 31   ;;  %vm270_vm0 = vcmask (!%p183_p3), 138240   ;;  %vm280_vm1 = vcmask (!%p183_p3), 252928   ;;  %vm290_vm2 = vcmask (!%p183_p3), 269312  }
   0xb   : > { %s1033_s11 = smov (!%p183_p3), 33   ;;  %s1034_s14 = smov (!%p183_p3), 47   ;;  %vm300_vm3 = vcmask (!%p183_p3), 384000   ;;  %vm310_vm4 = vcmask (!%p183_p3), 400384   ;;  %vm251_vm5 = vcmask (!%p183_p3), 121856   ;;  %vm322_vm6 = vcmask (!%p183_p3), 1039360  }
   0xc   : > { %v241_v4 = vsub.s32 (!%p183_p3), 0, %v240_v1  ;;  %v245_v5 = vsub.s32 (!%p183_p3), 1, %v240_v1  ;;  %s1035_s25 = smov (!%p183_p3), 49   ;;  %s1043_s6 = smov (!%p183_p3), 96   ;;  %vm332_vm7 = vcmask (!%p183_p3), 1031168   ;;  %vm342_vm8 = vcmask (!%p183_p3), 916480  }
   0xd   : > { %s1044_s7 = smov (!%p183_p3), 94   ;;  %vm350_vm9 = vcmask (!%p183_p3), 908288   ;;  %vm360_vm10 = vcmask (!%p183_p3), 900096   ;;  %vm370_vm11 = vcmask (!%p183_p3), 785408   ;;  %vm378_vm12 = vcmask (!%p183_p3), 777216   ;;  %p824_p7 = scmp.ne.s32.totalorder (!%p183_p3), %s1013_s15, 0 }
   0xe   : > { %v261_v6 = vrot.slane (!%p183_p3), %v821_v2, %v241_v4  ;;  %v242_v7 = vrot.slane (!%p183_p3), %v233_v3, %v241_v4  ;;  %v265_v8 = vrot.slane (!%p183_p3), %v821_v2, %v245_v5  ;;  %v246_v9 = vrot.slane (!%p183_p3), %v233_v3, %v245_v5 }
   0xf   : > { %vm388_vm13 = vcmask (!%p183_p3), 769024   ;;  %vm433_vm14 = vcmask (!%p183_p3), 924672   ;;  %vm451_vm15 = vcmask (!%p183_p3), 1043456  }
  0x10   : > { %s1287_s16 = smov (!%p215_p5, %s1017_s16), 1  ;;  %266 = vrot.lane.b32.xlu0 %v261_v6, %s1031_s28  ;;  %276 = vrot.lane.b32.xlu1 %v242_v7, %s1032_s29 }
  0x11   : > { %s218_s26 = scalar_select %p217_p6, %s1013_s15, 1 }
  0x12   : > { %s819_s27 = sshll.u32 %s1287_s16, 1  ;;  %s817_s10 = sshll.u32 %s1287_s16, 2 }
  0x13   : > { %s229_s30 = sadd.s32 %s819_s27, %s218_s26  ;;  %s816_s9 = sshll.u32 %s218_s26, 1 }
  0x14   : > { %s820_s5 = sshll.u32 %s229_s30, 3  ;;  %268 = vrot.lane.b32.xlu0 %v265_v8, %s1031_s28  ;;  %278 = vrot.lane.b32.xlu1 %v246_v9, %s1032_s29  ;;  %s221_s12 = sadd.s32 %s817_s10, %s816_s9 }
  0x15   : > { %s1121_s8 = scalar_lea.vmem %s1273_s4, %s820_s5  ;;  %s818_s13 = sshll.u32 %s221_s12, 3 }
  0x16   : > { %s1126_s24 = scalar_lea.vmem %s1269_s0, %s818_s13  ;;  %s1036_s16 = smov 15  }
  0x17   : > { %v236_v10 = vld [vmem:[%s1126_s24] sm:$0xff]  ;;  %v237_v11 = vld [vmem:[%s1126_s24 + $0x8] sm:$0xff]  ;;  %s1037_s26 = smov 127   ;;  %s1038_s27 = smov 112  }
  0x18   : > { %286 = vrot.lane.b32.xlu0 %v261_v6, %s1033_s11  ;;  %288 = vrot.lane.b32.xlu1 %v265_v8, %s1033_s11  ;;  %v911_v12 = vpack.i.bf16 %v237_v11, %v236_v10  ;;  %s1039_s28 = smov 126   ;;  %s1040_s29 = smov 110  }
  0x19   : > { %s1041_s30 = smov 111   ;;  %s1042_s5 = smov 95  }
  0x1a   : > { %s1045_s9 = smov 113   ;;  %s1048_s12 = smov 16  }
  0x1c   : > { %296 = vrot.lane.b32.xlu0 %v242_v7, %s1034_s14  ;;  %298 = vrot.lane.b32.xlu1 %v246_v9, %s1034_s14 }
  0x20   : > { %306 = vrot.lane.b32.xlu0 %v261_v6, %s1035_s25  ;;  %308 = vrot.lane.b32.xlu1 %v265_v8, %s1035_s25 }
  0x24   : > { %247 = vrot.lane.b32.xlu0 %v242_v7, %s1036_s16  ;;  %249 = vrot.lane.b32.xlu1 %v246_v9, %s1036_s16 }
  0x28   : > { %912 = vrot.lane.b32.xlu0 %v911_v12, %s1037_s26 }
  0x82   : > { %v1131_v13 = vpop.permute.xlu0 %266  ;;  %v1133_v14 = vpop.permute.xlu1 %276 }
  0x83   : > { %v274_v19 = vmul.f32 %v1131_v13, %v236_v10  ;;  %v284_v20 = vmul.f32 %v1133_v14, %v236_v10 }
  0x86   : > { %v269_v15 = vpop.permute.xlu0 %268  ;;  %v279_v16 = vpop.permute.xlu1 %278 }
  0x87   : > { %v271_v17 = vsel %vm270_vm0, %v1131_v13, %v269_v15  ;;  %v281_v18 = vsel %vm280_vm1, %v1133_v14, %v279_v16  ;;  %vm1274_vm0 = vcmask 588800   ;;  %vm501_vm1 = vcmask 130048  }
  0x88   : > { %v275_v21 = vmul.f32 %v271_v17, %v237_v11  ;;  %v285_v22 = vmul.f32 %v281_v18, %v237_v11 }
  0x8a   : > { %v1139_v23 = vpop.permute.xlu0 %286  ;;  %v289_v24 = vpop.permute.xlu1 %288  ;;  %v926_v25 = vpack.i.bf16 %v285_v22, %v284_v20  ;;  %v916_v26 = vpack.i.bf16 %v275_v21, %v274_v19 }
  0x8b   : > { %v294_v27 = vmul.f32 %v1139_v23, %v236_v10  ;;  %v291_v28 = vsel %vm290_vm2, %v1139_v23, %v289_v24  ;;  %vm512_vm2 = vcmask 1047680  }
  0x8c   : > { %v295_v29 = vmul.f32 %v291_v28, %v237_v11  ;;  %927 = vrot.lane.b32.xlu0 %v926_v25, %s1038_s27  ;;  %917 = vrot.lane.b32.xlu1 %v916_v26, %s1039_s28 }
  0x8e   : > { %v1145_v30 = vpop.permute.xlu0 %296  ;;  %v299_v31 = vpop.permute.xlu1 %298  ;;  %v931_v32 = vpack.i.bf16 %v295_v29, %v294_v27 }
  0x8f   : > { %v304_v33 = vmul.f32 %v1145_v30, %v236_v10  ;;  %v301_v34 = vsel %vm300_vm3, %v1145_v30, %v299_v31  ;;  %vm514_vm3 = vcmask 392192  }
  0x90   : > { %v305_v35 = vmul.f32 %v301_v34, %v237_v11  ;;  %932 = vrot.lane.b32.xlu0 %v931_v32, %s1040_s29  ;;  %922 = vrot.lane.b32.xlu1 %v911_v12, %s1041_s30 }
  0x92   : > { %v1151_v36 = vpop.permute.xlu0 %306  ;;  %v309_v37 = vpop.permute.xlu1 %308  ;;  %v941_v38 = vpack.i.bf16 %v305_v35, %v304_v33 }
  0x93   : > { %v314_v39 = vmul.f32 %v1151_v36, %v236_v10  ;;  %v311_v40 = vsel %vm310_vm4, %v1151_v36, %v309_v37  ;;  %vm516_vm4 = vcmask 523648  }
  0x94   : > { %v315_v41 = vmul.f32 %v311_v40, %v237_v11  ;;  %937 = vrot.lane.b32.xlu0 %v911_v12, %s1042_s5  ;;  %942 = vrot.lane.b32.xlu1 %v941_v38, %s1043_s6  ;;  %v1046_v12 = vmov 0  }
  0x95   : > { %490 = vmatprep.mubr.bf16.mxu0 %v1046_v12 }
  0x96   : > { %v946_v42 = vpack.i.bf16 %v315_v41, %v314_v39  ;;  %v1157_v43 = vpop.permute.xlu0 %247  ;;  %v250_v44 = vpop.permute.xlu1 %249 }
  0x97   : > { %v252_v45 = vsel %vm251_vm5, %v1157_v43, %v250_v44  ;;  %v255_v47 = vmul.f32 %v1157_v43, %v236_v10  ;;  %vm522_vm5 = vcmask (!%p824_p7), 261248  }
  0x98   : > { %947 = vrot.lane.b32.xlu1 %v946_v42, %s1044_s7  ;;  %v256_v46 = vmul.f32 %v252_v45, %v237_v11 }
  0x9a   : > { %v913_v48 = vpop.permute.xlu0 %912 }
  0x9b   : > { %v915_v49 = vunpack.i.h.bf16 %v913_v48  ;;  %v914_v50 = vunpack.i.l.bf16 %v913_v48 }
  0x9d   : > { %v394_v51 = vpack.c.bf16 %v915_v49, %v256_v46  ;;  %v323_v52 = vsel %vm322_vm6, %v914_v50, %v915_v49  ;;  %v392_v49 = vld [vmem:[%s1270_s1] sm:$0xf]  ;;  %v1047_v50 = vmov 0.0  }
  0x9e   : > { %v393_v53 = vpack.c.bf16 %v323_v52, %v255_v47  ;;  %502 = vst.msk [vmem:[#allocation2] sm:$0xff] %vm501_vm1, %v1047_v50 }
  0x9f   : > { %415 = vrot.lane.b32.xlu1 %v394_v51, %s1045_s9 }
  0xa0   : > { %413 = vrot.lane.b32.xlu0 %v393_v53, %s1045_s9 }
  0xfe   : > { %v928_v54 = vpop.permute.xlu0 %927  ;;  %v918_v55 = vpop.permute.xlu1 %917 }
  0xff   : > { %v930_v56 = vunpack.i.h.bf16 %v928_v54  ;;  %v929_v57 = vunpack.i.l.bf16 %v928_v54  ;;  %v920_v58 = vunpack.i.h.bf16 %v918_v55  ;;  %v919_v59 = vunpack.i.l.bf16 %v918_v55 }
 0x101   : > { %v396_v60 = vpack.c.bf16 %v930_v56, %v920_v58  ;;  %v333_v61 = vsel %vm332_vm7, %v919_v59, %v920_v58  ;;  %v343_v62 = vsel %vm342_vm8, %v929_v57, %v930_v56 }
 0x102   : > { %v933_v63 = vpop.permute.xlu0 %932  ;;  %v923_v0 = vpop.permute.xlu1 %922  ;;  %v395_v1 = vpack.c.bf16 %v343_v62, %v333_v61 }
 0x103   : > { %v935_v2 = vunpack.i.h.bf16 %v933_v63  ;;  %v934_v3 = vunpack.i.l.bf16 %v933_v63  ;;  %v925_v4 = vunpack.i.h.bf16 %v923_v0  ;;  %v924_v5 = vunpack.i.l.bf16 %v923_v0  ;;  %419 = vrot.lane.b32.xlu1 %v396_v60, %s1045_s9 }
 0x104   : > { %417 = vrot.lane.b32.xlu0 %v395_v1, %s1045_s9  ;;  %v1049_v60 = vmov (!%p824_p7), 0.0  }
 0x105   : > { %v398_v6 = vpack.c.bf16 %v935_v2, %v925_v4  ;;  %v351_v7 = vsel %vm350_vm9, %v924_v5, %v925_v4  ;;  %v361_v8 = vsel %vm360_vm10, %v934_v3, %v935_v2 }
 0x106   : > { %v938_v9 = vpop.permute.xlu0 %937  ;;  %v943_v10 = vpop.permute.xlu1 %942  ;;  %v397_v11 = vpack.c.bf16 %v361_v8, %v351_v7 }
 0x107   : > { %v940_v15 = vunpack.i.h.bf16 %v938_v9  ;;  %v939_v16 = vunpack.i.l.bf16 %v938_v9  ;;  %v945_v17 = vunpack.i.h.bf16 %v943_v10  ;;  %v944_v18 = vunpack.i.l.bf16 %v943_v10  ;;  %423 = vrot.lane.b32.xlu1 %v398_v6, %s1045_s9 }
 0x108   : > { %421 = vrot.lane.b32.xlu0 %v397_v11, %s1045_s9 }
 0x109   : > { %v400_v19 = vpack.c.bf16 %v940_v15, %v945_v17  ;;  %v371_v20 = vsel %vm370_vm11, %v944_v18, %v945_v17  ;;  %v379_v21 = vsel %vm378_vm12, %v939_v16, %v940_v15 }
 0x10a   : > { %v948_v22 = vpop.permute.xlu1 %947  ;;  %v399_v24 = vpack.c.bf16 %v379_v21, %v371_v20 }
 0x10b   : > { %v950_v25 = vunpack.i.h.bf16 %v948_v22  ;;  %v949_v26 = vunpack.i.l.bf16 %v948_v22  ;;  %427 = vrot.lane.b32.xlu1 %v400_v19, %s1045_s9 }
 0x10c   : > { %425 = vrot.lane.b32.xlu0 %v399_v24, %s1045_s9 }
 0x10d   : > { %v402_v27 = vpack.c.bf16 %v950_v25, %v950_v25  ;;  %v389_v28 = vsel %vm388_vm13, %v949_v26, %v950_v25 }
 0x10e   : > { %v401_v29 = vpack.c.bf16 %v389_v28, %v389_v28 }
 0x10f   : > { %431 = vrot.lane.b32.xlu1 %v402_v27, %s1045_s9 }
 0x110   : > { %429 = vrot.lane.b32.xlu0 %v401_v29, %s1045_s9 }
 0x111   : > { %v416_v31 = vpop.permute.xlu1 %415 }
 0x112   : > { %v414_v32 = vpop.permute.xlu0 %413  ;;  %458 = vmatprep.subr.bf16.mxu0 %v416_v31 }
 0x113   : > { %v434_v33 = vsel %vm433_vm14, %v414_v32, %v416_v31 }
 0x114   : > { %459 = vmatpush1.bf16.msra.mxu0 %v434_v33 }
 0x175   : > { %v420_v34 = vpop.permute.xlu1 %419 }
 0x176   : > { %460 = vmatprep.subr.bf16.mxu0 %v420_v34  ;;  %v418_v35 = vpop.permute.xlu0 %417 }
 0x177   : > { %v435_v37 = vsel %vm433_vm14, %v418_v35, %v420_v34 }
 0x178   : > { %461 = vmatpush1.bf16.msra.mxu0 %v435_v37 }
 0x179   : > { %v424_v38 = vpop.permute.xlu1 %423 }
 0x17a   : > { %462 = vmatprep.subr.bf16.mxu0 %v424_v38  ;;  %v422_v39 = vpop.permute.xlu0 %421 }
 0x17b   : > { %v436_v40 = vsel %vm433_vm14, %v422_v39, %v424_v38 }
 0x17c   : > { %463 = vmatpush1.bf16.msra.mxu0 %v436_v40 }
 0x17d   : > { %v428_v41 = vpop.permute.xlu1 %427 }
 0x17e   : > { %464 = vmatprep.subr.bf16.mxu0 %v428_v41  ;;  %v426_v42 = vpop.permute.xlu0 %425 }
 0x17f   : > { %v437_v44 = vsel %vm433_vm14, %v426_v42, %v428_v41 }
 0x180   : > { %465 = vmatpush1.bf16.msra.mxu0 %v437_v44 }
 0x181   : > { %v432_v45 = vpop.permute.xlu1 %431 }
 0x182   : > { %822 = vmatprep.subr.msk.bf16.mxu0 %vm451_vm15, %v432_v45  ;;  %v430_v46 = vpop.permute.xlu0 %429 }
 0x183   : > { %v438_v47 = vsel %vm433_vm14, %v430_v46, %v432_v45 }
 0x184   : > { %v453_v48 = vsel %vm451_vm15, %v438_v47, 0 }
 0x185   : > { %467 = vmatpush1.bf16.msra.mxu0 %v453_v48 }
 0x188   : > { %823 = vmatmul.mubr.msk.bf16.vlgmr.msra.gmra.mrb[0].mxu0 %vm1274_vm0, %v392_v49 }
 0x25b   : > { %v492_v51 = vpop.f32.mrb[0].mxu0 }
 0x25c   : > { %v499_v52 = vmax.f32 %v492_v51, 0.0  ;;  %v494_v53 = vpop.f32.mrb[1].mxu0 }
 0x25d   : > { %v500_v54 = vmax.f32 %v494_v53, 0.0  ;;  %v496_v55 = vpop.f32.mrb[2].mxu0 }
 0x25e   : > { %505 = vrot.lane.b32.xlu0 %v499_v52, %s1048_s12  ;;  %v497_v56 = vpop.f32.mrb[3].mxu0 }
 0x25f   : > { %507 = vrot.lane.b32.xlu1 %v500_v54, %s1048_s12 }
 0x2ce   : > { %521 = sbr.rel (%p824_p7) target bundleno = 725 (0x2d5), region = 40 }
 0x2d0   : > { %v506_v57 = vpop.permute.xlu0 %505 }
 0x2d1   : > { %513 = vst.msk [vmem:[#allocation2] sm:$0xff] %vm512_vm2, %v506_v57  ;;  %v508_v58 = vpop.permute.xlu1 %507 }
 0x2d2   : > { %v509_v59 = vsel %vm501_vm1, %v506_v57, %v508_v58  ;;  %523 = vst.msk [vmem:[#allocation2] sm:$0xff] (!%p824_p7), %vm522_vm5, %v1049_v60 }
 0x2d3   : > { %515 = vst.msk [vmem:[#allocation2 + $0x8] sm:$0xff] %vm514_vm3, %v509_v59 }
 0x2d4   : > { %517 = vst.msk [vmem:[#allocation2 + $0x8] sm:$0xff] %vm516_vm4, %v1047_v50 }
 0x2d5 PF: > { %p825_p8 = scmp.ne.s32.totalorder %s1013_s15, 1 }
 0x2d6   : > { %vm528_vm0 = vcmask (!%p825_p8), 392448   ;;  %v1050_v61 = vmov (!%p825_p8), 0.0  }
 0x2d7   : > { %527 = sbr.rel (%p825_p8) target bundleno = 734 (0x2de), region = 44  ;;  %529 = vst.msk [vmem:[#allocation2 + $0x8] sm:$0xff] (!%p825_p8), %vm528_vm0, %v1050_v61 }
 0x2de PF: > { %v530_v62 = vld [vmem:[#allocation2] sm:$0xff]  ;;  %v531_v63 = vld [vmem:[#allocation2 + $0x8] sm:$0xff]  ;;  %835 = vmatprep.subr.bf16.mxu1 %v1047_v50  ;;  %s1052_s15 = smov 80  }
 0x2df   : > { %v951_v0 = vpack.i.bf16 %v531_v63, %v530_v62  ;;  %v536_v1 = vmul.f32 %v530_v62, %v1133_v14  ;;  %v537_v2 = vmul.f32 %v531_v63, %v1133_v14  ;;  %v534_v3 = vmul.f32 %v530_v62, %v1131_v13  ;;  %v710_v61 = vld [vmem:[%s1126_s24 + $0x8] sm:$0xff] }
 0x2e0   : > { %v535_v4 = vmul.f32 %v531_v63, %v1131_v13  ;;  %v538_v6 = vmul.f32 %v530_v62, %v1139_v23  ;;  %v539_v7 = vmul.f32 %v531_v63, %v1139_v23  ;;  %v540_v9 = vmul.f32 %v530_v62, %v1145_v30 }
 0x2e1   : > { %952 = vrot.lane.b32.xlu0 %v951_v0, %s1037_s26  ;;  %v961_v5 = vpack.i.bf16 %v537_v2, %v536_v1  ;;  %v541_v10 = vmul.f32 %v531_v63, %v1145_v30  ;;  %v542_v11 = vmul.f32 %v530_v62, %v1151_v36  ;;  %v543_v12 = vmul.f32 %v531_v63, %v1151_v36 }
 0x2e2   : > { %v956_v8 = vpack.i.bf16 %v535_v4, %v534_v3  ;;  %v971_v14 = vpack.i.bf16 %v539_v7, %v538_v6  ;;  %v533_v30 = vmul.f32 %v531_v63, %v1157_v43  ;;  %v532_v16 = vmul.f32 %v530_v62, %v1157_v43  ;;  %v709_v62 = vld [vmem:[%s1126_s24] sm:$0xff] }
 0x2e3   : > { %962 = vrot.lane.b32.xlu1 %v961_v5, %s1038_s27  ;;  %v976_v13 = vpack.i.bf16 %v541_v10, %v540_v9  ;;  %v986_v23 = vpack.i.bf16 %v543_v12, %v542_v11 }
 0x2e5   : > { %957 = vrot.lane.b32.xlu0 %v956_v8, %s1039_s28 }
 0x2e7   : > { %967 = vrot.lane.b32.xlu1 %v951_v0, %s1041_s30 }
 0x2e9   : > { %972 = vrot.lane.b32.xlu0 %v971_v14, %s1040_s29 }
 0x2eb   : > { %977 = vrot.lane.b32.xlu1 %v976_v13, %s1043_s6 }
 0x2ed   : > { %982 = vrot.lane.b32.xlu0 %v951_v0, %s1042_s5 }
 0x2ef   : > { %987 = vrot.lane.b32.xlu1 %v986_v23, %s1044_s7  ;;  %v612_v23 = vld [vmem:[%s1271_s2] sm:$0xf] }
 0x353   : > { %v953_v15 = vpop.permute.xlu0 %952 }
 0x354   : > { %v955_v17 = vunpack.i.h.bf16 %v953_v15  ;;  %v954_v18 = vunpack.i.l.bf16 %v953_v15 }
 0x355   : > { %v963_v19 = vpop.permute.xlu1 %962 }
 0x356   : > { %v965_v20 = vunpack.i.h.bf16 %v963_v19  ;;  %v964_v21 = vunpack.i.l.bf16 %v963_v19  ;;  %v614_v36 = vpack.c.bf16 %v955_v17, %v533_v30  ;;  %v550_v22 = vsel %vm322_vm6, %v954_v18, %v955_v17 }
 0x357   : > { %v958_v24 = vpop.permute.xlu0 %957  ;;  %v613_v25 = vpack.c.bf16 %v550_v22, %v532_v16  ;;  %vm1051_vm6 = vmmov 0  }
 0x358   : > { %v960_v26 = vunpack.i.h.bf16 %v958_v24  ;;  %v959_v27 = vunpack.i.l.bf16 %v958_v24  ;;  %635 = vrot.lane.b32.xlu1 %v614_v36, %s1045_s9  ;;  %v568_v28 = vsel %vm342_vm8, %v964_v21, %v965_v20  ;;  %845 = vmatprep.mubr.msk.bf16.mxu1 %vm1051_vm6, %v1047_v50  ;;  %vm717_vm8 = vcmask 654336  }
 0x359   : > { %633 = vrot.lane.b32.xlu0 %v613_v25, %s1045_s9  ;;  %v968_v29 = vpop.permute.xlu1 %967 }
 0x35a   : > { %v970_v43 = vunpack.i.h.bf16 %v968_v29  ;;  %v969_v31 = vunpack.i.l.bf16 %v968_v29  ;;  %v616_v32 = vpack.c.bf16 %v965_v20, %v960_v26  ;;  %v559_v33 = vsel %vm332_vm7, %v959_v27, %v960_v26 }
 0x35b   : > { %v973_v34 = vpop.permute.xlu0 %972  ;;  %v615_v35 = vpack.c.bf16 %v568_v28, %v559_v33  ;;  %vm1275_vm7 = vcmask 588800  }
 0x35c   : > { %v975_v37 = vunpack.i.h.bf16 %v973_v34  ;;  %v974_v38 = vunpack.i.l.bf16 %v973_v34  ;;  %639 = vrot.lane.b32.xlu1 %v616_v32, %s1045_s9  ;;  %v575_v39 = vsel %vm350_vm9, %v969_v31, %v970_v43 }
 0x35d   : > { %637 = vrot.lane.b32.xlu0 %v615_v35, %s1045_s9  ;;  %v978_v40 = vpop.permute.xlu1 %977 }
 0x35e   : > { %v980_v41 = vunpack.i.h.bf16 %v978_v40  ;;  %v979_v42 = vunpack.i.l.bf16 %v978_v40  ;;  %v618_v44 = vpack.c.bf16 %v975_v37, %v970_v43  ;;  %v584_v45 = vsel %vm360_vm10, %v974_v38, %v975_v37 }
 0x35f   : > { %v983_v46 = vpop.permute.xlu0 %982  ;;  %v617_v47 = vpack.c.bf16 %v584_v45, %v575_v39 }
 0x360   : > { %v985_v48 = vunpack.i.h.bf16 %v983_v46  ;;  %v984_v49 = vunpack.i.l.bf16 %v983_v46  ;;  %643 = vrot.lane.b32.xlu1 %v618_v44, %s1045_s9  ;;  %v593_v51 = vsel %vm370_vm11, %v979_v42, %v980_v41 }
 0x361   : > { %641 = vrot.lane.b32.xlu0 %v617_v47, %s1045_s9  ;;  %v988_v52 = vpop.permute.xlu1 %987 }
 0x362   : > { %v990_v53 = vunpack.i.h.bf16 %v988_v52  ;;  %v989_v54 = vunpack.i.l.bf16 %v988_v52  ;;  %v620_v55 = vpack.c.bf16 %v985_v48, %v980_v41  ;;  %v600_v56 = vsel %vm378_vm12, %v984_v49, %v985_v48 }
 0x363   : > { %v619_v57 = vpack.c.bf16 %v600_v56, %v593_v51 }
 0x364   : > { %647 = vrot.lane.b32.xlu1 %v620_v55, %s1045_s9  ;;  %v622_v58 = vpack.c.bf16 %v990_v53, %v990_v53  ;;  %v609_v59 = vsel %vm388_vm13, %v989_v54, %v990_v53 }
 0x365   : > { %645 = vrot.lane.b32.xlu0 %v619_v57, %s1045_s9  ;;  %v621_v60 = vpack.c.bf16 %v609_v59, %v609_v59 }
 0x368   : > { %651 = vrot.lane.b32.xlu1 %v622_v58, %s1045_s9 }
 0x369   : > { %649 = vrot.lane.b32.xlu0 %v621_v60, %s1045_s9 }
 0x36c   : > { %715 = vrot.lane.b32.xlu1 %v710_v61, %s1052_s15 }
 0x36d   : > { %713 = vrot.lane.b32.xlu0 %v709_v62, %s1052_s15 }
 0x3ca   : > { %v636_v63 = vpop.permute.xlu1 %635 }
 0x3cb   : > { %v634_v0 = vpop.permute.xlu0 %633 }
 0x3cc   : > { %v653_v1 = vsel %vm433_vm14, %v634_v0, %v636_v63 }
 0x3cd   : > { %836 = vmatpush3.bf16.msra.mxu1 %v653_v1 }
 0x3ce   : > { %v640_v2 = vpop.permute.xlu1 %639  ;;  %837 = vmatprep.subr.bf16.mxu1 %v1047_v50 }
 0x3cf   : > { %v638_v3 = vpop.permute.xlu0 %637 }
 0x3d0   : > { %v654_v4 = vsel %vm433_vm14, %v638_v3, %v640_v2 }
 0x3d1   : > { %838 = vmatpush3.bf16.msra.mxu1 %v654_v4 }
 0x3d2   : > { %v644_v5 = vpop.permute.xlu1 %643  ;;  %839 = vmatprep.subr.bf16.mxu1 %v1047_v50 }
 0x3d3   : > { %v642_v6 = vpop.permute.xlu0 %641 }
 0x3d4   : > { %v655_v7 = vsel %vm433_vm14, %v642_v6, %v644_v5 }
 0x3d5   : > { %840 = vmatpush3.bf16.msra.mxu1 %v655_v7 }
 0x3d6   : > { %v648_v8 = vpop.permute.xlu1 %647  ;;  %841 = vmatprep.subr.bf16.mxu1 %v1047_v50 }
 0x3d7   : > { %v646_v9 = vpop.permute.xlu0 %645 }
 0x3d8   : > { %v656_v10 = vsel %vm433_vm14, %v646_v9, %v648_v8 }
 0x3d9   : > { %842 = vmatpush3.bf16.msra.mxu1 %v656_v10 }
 0x3da   : > { %v652_v14 = vpop.permute.xlu1 %651  ;;  %843 = vmatprep.subr.bf16.mxu1 %v1047_v50 }
 0x3db   : > { %v650_v13 = vpop.permute.xlu0 %649 }
 0x3dc   : > { %v657_v11 = vsel %vm433_vm14, %v650_v13, %v652_v14 }
 0x3dd   : > { %v666_v12 = vsel %vm451_vm15, %v657_v11, 0 }
 0x3de   : > { %844 = vmatpush3.bf16.msra.mxu1 %v666_v12  ;;  %v716_v30 = vpop.permute.xlu1 %715 }
 0x3df   : > { %v714_v15 = vpop.permute.xlu0 %713 }
 0x3e0   : > { %v718_v17 = vsel %vm717_vm8, %v714_v15, %v716_v30 }
 0x3e1   : > { %846 = vmatmul.mubr.msk.bf16.vlgmr.msra.gmra.mrb[0].mxu1 %vm1275_vm7, %v612_v23 }
 0x4b4   : > { %v702_v16 = vpop.f32.mrb[0].mxu1 }
 0x4b5   : > { %v708_v18 = vmax.f32 %v702_v16, 0.0  ;;  %v847_v50 = vpop.f32.mrb[1].mxu1 }
 0x4b6   : > { %v705_v19 = vpop.f32.mrb[2].mxu1 }
 0x4b7   : > { %v720_v20 = vadd.f32 %v718_v17, %v708_v18  ;;  %v848_v21 = vpop.f32.mrb[3].mxu1 }
 0x4b9   : > { %721 = vst [vmem:[%s1121_s8] sm:$0xff] %v720_v20 }
 0x4ba PF: > { %s14_s19 = sadd.s32 1, %s1029_s19   ;;  %s1276_s15 = smov %s1021_s17 }
 0x4bb   : > { %p11_p9 = scmp.ge.s32.totalorder %s14_s19, 6   ;;  %s1277_s16 = smov %s1025_s18 }
 0x4bc   : > { %s1278_s17 = smov %s1281_s20  ;;  %s1279_s18 = smov %s1285_s21 }
 0x4bd   :  { %13 = sbr.rel (!%p11_p9) target bundleno = 3 (0x3), region = 75 }

</bundles_post_ra>
